<compile_context>
chip_gen: v7x
topology: tpu7x:2x2x1
jax: 0.10.0
libtpu: 0.0.40
codegen_flags: <defaults>
</compile_context>

<pallas_src>
import functools

import jax
import jax.numpy as jnp
import numpy as np
from jax import lax
from jax.experimental import pallas as pl
from jax.experimental.pallas import tpu as pltpu


def _regloss_kernel(ws_ref, sf_ref, out_ref, *, lambda_s, n_ws, n_sf, batch):
    # ws_ref : (TB, S_ws_blk, D)   VMEM (auto-pipelined block)
    # sf_ref : (TB, S_sf_blk, D2)  VMEM
    # out_ref: (1, 8, 128)         VMEM partial-sum block for this grid step
    pid = pl.program_id(0)
    tb = ws_ref.shape[0]

    ws = ws_ref[...].astype(jnp.float32)
    sf = sf_ref[...].astype(jnp.float32)

    # ws term: ||ws[b,i,:] - ws[b,0,:]||.  Stage 0 contributes exactly 0, so we
    # compute it for every stage in the block and rely on the stage mask for
    # truncation.  This also makes n_ws == 1 (stage=0) a clean no-op: no empty
    # slices ever reach Mosaic.
    delta = ws - ws[:, 0:1, :]
    ws_sq = jnp.sum(delta * delta, axis=-1)        # (TB, S_ws_blk)
    sf_sq = jnp.sum(sf * sf, axis=-1)              # (TB, S_sf_blk)

    # Masks: stages beyond the truncation point and batch rows beyond B
    # (ragged last block) are forced to 0 via `where`, so padded / garbage VMEM
    # contents (even inf/nan) cannot leak into the sum.
    rows_ws = pid * tb + lax.broadcasted_iota(jnp.int32, ws_sq.shape, 0)
    stg_ws = lax.broadcasted_iota(jnp.int32, ws_sq.shape, 1)
    ws_norm = jnp.where((rows_ws < batch) & (stg_ws < n_ws), jnp.sqrt(ws_sq), 0.0)

    rows_sf = pid * tb + lax.broadcasted_iota(jnp.int32, sf_sq.shape, 0)
    stg_sf = lax.broadcasted_iota(jnp.int32, sf_sq.shape, 1)
    sf_norm = jnp.where((rows_sf < batch) & (stg_sf < n_sf), jnp.sqrt(sf_sq), 0.0)

    partial = jnp.sum(ws_norm) + jnp.float32(lambda_s) * jnp.sum(sf_norm)
    # Lane-dense (1, 8, 128) output block; the wrapper reads [:, 0, 0].
    out_ref[...] = jnp.broadcast_to(partial, out_ref.shape).astype(jnp.float32)


def _round_up(x, m):
    return ((x + m - 1) // m) * m


def reg_loss(ws_id, sf_d1, stage=18, lambda_s=1.0):
    """Pallas implementation of RegLoss.forward. Returns a scalar float32."""
    B, S_ws, D = ws_id.shape
    B2, S_sf, D2 = sf_d1.shape
    assert B == B2, "batch dims must match"

    # Static truncation counts (stage is a Python int), expressed through the
    # BlockSpec stage-block sizes below -- NOT via a wrapper slice (which would
    # write a truncated copy to HBM and re-read it).
    n_ws = min(S_ws, stage + 1)
    n_sf = min(S_sf, stage + 1)
    s_ws_blk = S_ws if _round_up(n_ws, 8) >= S_ws else _round_up(n_ws, 8)
    s_sf_blk = S_sf if _round_up(n_sf, 8) >= S_sf else _round_up(n_sf, 8)

    # Bytes of HBM actually read per batch row (input dtype, pre-upcast).
    row_bytes = (s_ws_blk * D * ws_id.dtype.itemsize
                 + s_sf_blk * D2 * sf_d1.dtype.itemsize)

    # Generation-aware sizing: v5e/v6e have 128 MiB physical VMEM, v7x 64 MiB.
    try:
        vmem_cap = int(pltpu.get_tpu_info().vmem_capacity_bytes)
    except Exception:  # interpret mode / API variation: be conservative
        vmem_cap = 64 * 1024 * 1024
    vmem_limit = min(vmem_cap // 2, 64 * 1024 * 1024)
    # Double-buffered input blocks plus headroom for the in-kernel f32 temps.
    dma_budget = vmem_cap // 8

    tb = max(1, dma_budget // (2 * max(row_bytes, 1)))
    tb = min(tb, B)
    if tb >= 8:
        tb -= tb % 8  # sublane-friendly leading dim when possible
    num_blocks = pl.cdiv(B, tb)

    kernel = functools.partial(
        _regloss_kernel,
        lambda_s=float(lambda_s), n_ws=n_ws, n_sf=n_sf, batch=B,
    )

    cost = pl.CostEstimate(
        flops=int(3 * B * (s_ws_blk * D + s_sf_blk * D2)),
        transcendentals=int(B * (s_ws_blk + s_sf_blk)),       # sqrt
        bytes_accessed=int(B * row_bytes + num_blocks * 8 * 128 * 4),
    )

    partials = pl.pallas_call(
        kernel,
        out_shape=jax.ShapeDtypeStruct((num_blocks, 8, 128), jnp.float32),
        grid=(num_blocks,),
        in_specs=[
            pl.BlockSpec((tb, s_ws_blk, D), lambda i: (i, 0, 0)),
            pl.BlockSpec((tb, s_sf_blk, D2), lambda i: (i, 0, 0)),
        ],
        out_specs=pl.BlockSpec((1, 8, 128), lambda i: (i, 0, 0)),
        compiler_params=pltpu.CompilerParams(
            # per-block partials -> no carried accumulator -> v7x megacore split
            dimension_semantics=("parallel",),
            vmem_limit_bytes=int(vmem_limit),
        ),
        cost_estimate=cost,
    )(ws_id, sf_d1)

    return jnp.sum(partials[:, 0, 0]) / jnp.float32(B)


def _reference(ws_id, sf_d1, stage=18, lambda_s=1.0):
    # pure-JAX reference mirroring the PyTorch loops
    n_ws = min(ws_id.shape[1], stage + 1)
    n_sf = min(sf_d1.shape[1], stage + 1)
    delta = ws_id[:, 1:n_ws, :] - ws_id[:, 0:1, :]
    l_ws = jnp.sum(jnp.sqrt(jnp.sum(delta * delta, axis=-1)), axis=-1)
    l_sf = jnp.sum(jnp.sqrt(jnp.sum(sf_d1[:, :n_sf, :] ** 2, axis=-1)), axis=-1)
    return jnp.mean(l_ws + lambda_s * l_sf)


if __name__ == "__main__":
    key = jax.random.PRNGKey(0)

    configs = [
        # (B, S_ws, D, S_sf, D2, stage, lambda_s)
        (2, 8, 32, 8, 32, 18, 1.0),     # stage+1 >= S: full stages, single block
        (10, 40, 32, 24, 64, 18, 0.5),  # stage truncation (19/40) + ragged batch block
        (2, 8, 32, 8, 32, 0, 1.0),      # stage=0 edge case: ws term is exactly 0
    ]
    for idx, (B, S_ws, D, S_sf, D2, stage, lam) in enumerate(configs):
        k1, k2 = jax.random.split(jax.random.fold_in(key, idx))
        ws_id = jax.random.normal(k1, (B, S_ws, D), dtype=jnp.float32)
        sf_d1 = jax.random.normal(k2, (B, S_sf, D2), dtype=jnp.float32)

        out = jax.block_until_ready(reg_loss(ws_id, sf_d1, stage=stage, lambda_s=lam))
        ref = jax.block_until_ready(_reference(ws_id, sf_d1, stage=stage, lambda_s=lam))
        np.testing.assert_allclose(np.asarray(out), np.asarray(ref),
                                   rtol=1e-5, atol=1e-5)

    print("KERNEL_OK")
</pallas_src>

<mosaic_0001>
module attributes {stable_mosaic.version = 11 : i64} {
  func.func @_regloss_kernel(%arg0: i32, %arg1: memref<2x8x32xf32, #tpu.memory_space<vmem>>, %arg2: memref<2x8x32xf32, #tpu.memory_space<vmem>>, %arg3: memref<1x8x128xf32, #tpu.memory_space<vmem>>) attributes {dimension_semantics = [#tpu.dimension_semantics<parallel>], iteration_bounds = array<i64: 1>, scalar_prefetch = 0 : i64, scratch_operands = 0 : i64, tpu.core_type = #tpu.core_type<tc>, window_params = [{transform_indices = @transform_0, window_bounds = array<i64: 2, 8, 32>}, {transform_indices = @transform_1, window_bounds = array<i64: 2, 8, 32>}, {transform_indices = @transform_2, window_bounds = array<i64: 1, 8, 128>}]} {
    %c0 = arith.constant 0 : index
    %c0_0 = arith.constant 0 : index
    %c0_1 = arith.constant 0 : index
    %0 = vector.load %arg1[%c0, %c0_0, %c0_1] : memref<2x8x32xf32, #tpu.memory_space<vmem>>, vector<2x8x32xf32>
    %c0_2 = arith.constant 0 : index
    %c0_3 = arith.constant 0 : index
    %c0_4 = arith.constant 0 : index
    %1 = vector.load %arg2[%c0_2, %c0_3, %c0_4] : memref<2x8x32xf32, #tpu.memory_space<vmem>>, vector<2x8x32xf32>
    %2 = vector.extract_strided_slice %0 {offsets = [0, 0, 0], sizes = [2, 1, 32], strides = [1, 1, 1]} : vector<2x8x32xf32> to vector<2x1x32xf32>
    %3 = vector.broadcast %2 : vector<2x1x32xf32> to vector<2x8x32xf32>
    %4 = arith.subf %0, %3 : vector<2x8x32xf32>
    %5 = arith.mulf %4, %4 : vector<2x8x32xf32>
    %cst = arith.constant dense<0.000000e+00> : vector<2x8xf32>
    %6 = vector.multi_reduction <add>, %5, %cst [2] : vector<2x8x32xf32> to vector<2x8xf32>
    %7 = arith.mulf %1, %1 : vector<2x8x32xf32>
    %cst_5 = arith.constant dense<0.000000e+00> : vector<2x8xf32>
    %8 = vector.multi_reduction <add>, %7, %cst_5 [2] : vector<2x8x32xf32> to vector<2x8xf32>
    %c2_i32 = arith.constant 2 : i32
    %9 = arith.muli %arg0, %c2_i32 : i32
    %10 = tpu.iota {dimensions = array<i32: 0>} : vector<2x8xi32>
    %11 = vector.broadcast %9 : i32 to vector<2x8xi32>
    %12 = arith.addi %11, %10 : vector<2x8xi32>
    %13 = tpu.iota {dimensions = array<i32: 1>} : vector<2x8xi32>
    %c2_i32_6 = arith.constant 2 : i32
    %14 = vector.broadcast %c2_i32_6 : i32 to vector<2x8xi32>
    %15 = arith.cmpi slt, %12, %14 : vector<2x8xi32>
    %c8_i32 = arith.constant 8 : i32
    %16 = vector.broadcast %c8_i32 : i32 to vector<2x8xi32>
    %17 = arith.cmpi slt, %13, %16 : vector<2x8xi32>
    %18 = arith.andi %15, %17 : vector<2x8xi1>
    %19 = math.sqrt %6 : vector<2x8xf32>
    %cst_7 = arith.constant 0.000000e+00 : f32
    %20 = vector.broadcast %cst_7 : f32 to vector<2x8xf32>
    %21 = arith.select %18, %19, %20 : vector<2x8xi1>, vector<2x8xf32>
    %c2_i32_8 = arith.constant 2 : i32
    %22 = arith.muli %arg0, %c2_i32_8 : i32
    %23 = tpu.iota {dimensions = array<i32: 0>} : vector<2x8xi32>
    %24 = vector.broadcast %22 : i32 to vector<2x8xi32>
    %25 = arith.addi %24, %23 : vector<2x8xi32>
    %26 = tpu.iota {dimensions = array<i32: 1>} : vector<2x8xi32>
    %c2_i32_9 = arith.constant 2 : i32
    %27 = vector.broadcast %c2_i32_9 : i32 to vector<2x8xi32>
    %28 = arith.cmpi slt, %25, %27 : vector<2x8xi32>
    %c8_i32_10 = arith.constant 8 : i32
    %29 = vector.broadcast %c8_i32_10 : i32 to vector<2x8xi32>
    %30 = arith.cmpi slt, %26, %29 : vector<2x8xi32>
    %31 = arith.andi %28, %30 : vector<2x8xi1>
    %32 = math.sqrt %8 : vector<2x8xf32>
    %cst_11 = arith.constant 0.000000e+00 : f32
    %33 = vector.broadcast %cst_11 : f32 to vector<2x8xf32>
    %34 = arith.select %31, %32, %33 : vector<2x8xi1>, vector<2x8xf32>
    %35 = vector.shape_cast %21 : vector<2x8xf32> to vector<1x2x8xf32>
    %cst_12 = arith.constant dense<0.000000e+00> : vector<1xf32>
    %36 = vector.multi_reduction <add>, %35, %cst_12 [1, 2] : vector<1x2x8xf32> to vector<1xf32>
    %37 = vector.shape_cast %36 : vector<1xf32> to vector<1x1x1xf32>
    %38 = vector.extract %37[0, 0, 0] : f32 from vector<1x1x1xf32>
    %39 = vector.shape_cast %34 : vector<2x8xf32> to vector<1x2x8xf32>
    %cst_13 = arith.constant dense<0.000000e+00> : vector<1xf32>
    %40 = vector.multi_reduction <add>, %39, %cst_13 [1, 2] : vector<1x2x8xf32> to vector<1xf32>
    %41 = vector.shape_cast %40 : vector<1xf32> to vector<1x1x1xf32>
    %42 = vector.extract %41[0, 0, 0] : f32 from vector<1x1x1xf32>
    %cst_14 = arith.constant 1.000000e+00 : f32
    %43 = arith.mulf %cst_14, %42 : f32
    %44 = arith.addf %38, %43 : f32
    %45 = vector.broadcast %44 : f32 to vector<1x8x128xf32>
    %c0_15 = arith.constant 0 : index
    %c0_16 = arith.constant 0 : index
    %c0_17 = arith.constant 0 : index
    %46 = vector.load %arg3[%c0_15, %c0_16, %c0_17] : memref<1x8x128xf32, #tpu.memory_space<vmem>>, vector<1x8x128xf32>
    tpu.vector_store %arg3[%c0_15, %c0_16, %c0_17], %45 {strides = array<i32>} : memref<1x8x128xf32, #tpu.memory_space<vmem>>, vector<1x8x128xf32>,
    return
  }
  func.func @transform_0(%arg0: i32) -> (i32, i32, i32) {
    %c0_i32 = arith.constant 0 : i32
    %c0_i32_0 = arith.constant 0 : i32
    %c0_i32_1 = arith.constant 0 : i32
    return %arg0, %c0_i32, %c0_i32_0 : i32, i32, i32
  }
  func.func @transform_1(%arg0: i32) -> (i32, i32, i32) {
    %c0_i32 = arith.constant 0 : i32
    %c0_i32_0 = arith.constant 0 : i32
    %c0_i32_1 = arith.constant 0 : i32
    return %arg0, %c0_i32, %c0_i32_0 : i32, i32, i32
  }
  func.func @transform_2(%arg0: i32) -> (i32, i32, i32) {
    %c0_i32 = arith.constant 0 : i32
    %c0_i32_0 = arith.constant 0 : i32
    %c0_i32_1 = arith.constant 0 : i32
    return %arg0, %c0_i32, %c0_i32_0 : i32, i32, i32
  }
}

</mosaic_0001>

<bundles_post_ra>
// kernel: tpu_custom_call.1
= control target key start
LH: loop header
LB: loop body
LE: loop exit
PB: predicated region body
PF: predicated region fallthrough
CT: control target
= control target key end

     0   :  { %7 = vsyncpa [#allocation3], 0  ;;  %s335_s0 = inlined_call_operand.hbm [shape: f32[2,8,32], index: 0, kind: input, shape index: {}]   ;;  %s336_s1 = inlined_call_operand.hbm [shape: f32[2,8,32], index: 1, kind: input, shape index: {}]   ;;  %s337_s2 = inlined_call_operand.hbm [shape: f32[1,8,128], index: 2, kind: output, shape index: {}]  }
   0x1   :  { %8 = vsyncpa [#allocation6], 0 }
   0x2   :  { %9 = vsyncpa [#allocation4], 0  ;;  %s265_s9 = smov [#allocation2]   ;;  %s193_s13 = scalar_lea.hbm %s335_s0, 256 }
   0x3   :  { %s15_s10 = sshll.u32 %s265_s9, 4  ;;  %p194_p0 = scmp.ne.s32.totalorder %s335_s0, %s193_s13  ;;  %s16_s10 = int_to_ptr.vmem [resolvable:$true] %s15_s10 }
   0x4   :  { %p197_p1 = scmp.lt.u32.totalorder %s193_s13, %s335_s0 }
   0x6   :  { %p199_p2 = pnand %p197_p1, %p194_p0 }
   0x8   :  { %202 = shalt.err (!%p199_p2)
}
   0x9   :  { %s203_s18 = scalar_lea.vmem %s16_s10, 256  ;;  %p208_p4 = scmp.lt.s32.totalorder %s16_s10, %s16_s10 }
   0xa   :  { %p204_p3 = scmp.ne.s32.totalorder %s16_s10, %s203_s18  ;;  %p209_p5 = scmp.lt.s32.totalorder %s203_s18, %s203_s18 }
   0xc   :  { %p210_p6 = por %p209_p5, %p208_p4 }
   0xe   :  { %p211_p7 = pnand %p210_p6, %p204_p3 }
  0x10   :  { %214 = shalt.err (!%p211_p7)
}
  0x11   :  { %s266_s19 = smov 128   ;;  %s267_s20 = smov 8  }
  0x12   :  { %21 = dma.hbm_to_vmem [thread:$0]  %s335_s0, 256, %s16_s10, [#allocation3], %s266_s19, %s266_s19, %s267_s20  }
  0x13   :  { %s268_s23 = smov [#allocation5]   ;;  %s215_s27 = scalar_lea.hbm %s336_s1, 256 }
  0x14   :  { %s27_s24 = sshll.u32 %s268_s23, 4  ;;  %p216_p8 = scmp.ne.s32.totalorder %s336_s1, %s215_s27  ;;  %s28_s24 = int_to_ptr.vmem [resolvable:$true] %s27_s24 }
  0x15   :  { %p219_p9 = scmp.lt.u32.totalorder %s215_s27, %s336_s1 }
  0x17   :  { %p221_p10 = pnand %p219_p9, %p216_p8 }
  0x19   :  { %224 = shalt.err (!%p221_p10)
}
  0x1a   :  { %s225_s4 = scalar_lea.vmem %s28_s24, 256  ;;  %p230_p12 = scmp.lt.s32.totalorder %s28_s24, %s28_s24 }
  0x1b   :  { %p226_p11 = scmp.ne.s32.totalorder %s28_s24, %s225_s4  ;;  %p231_p13 = scmp.lt.s32.totalorder %s225_s4, %s225_s4 }
  0x1d   :  { %p232_p0 = por %p231_p13, %p230_p12 }
  0x1f   :  { %p233_p1 = pnand %p232_p0, %p226_p11 }
  0x21   :  { %236 = shalt.err (!%p233_p1)
}
  0x22   :  { %33 = dma.hbm_to_vmem [thread:$0]  %s336_s1, 256, %s28_s24, [#allocation6], %s266_s19, %s266_s19, %s267_s20  }
  0x23   :  { %259 = dma.done.wait [#allocation3], 256  }
  0x24   :  { %260 = vsyncadd [#allocation3], 4294967040 }
  0x25   :  { %261 = dma.done.wait [#allocation6], 256  }
  0x26   :  { %262 = vsyncadd [#allocation6], 4294967040  ;;  %v44_v0 = vlaneseq  ;;  %v42_v3 = vld [vmem:[#allocation5] sm:$0xff]  ;;  %vm56_vm0 = vcmask 261120   ;;  %v43_v4 = vld [vmem:[#allocation5 + $0x8] sm:$0xff]  ;;  %vm105_vm9 = vcmask 1041409  }
  0x27   :  { %v40_v5 = vld [vmem:[#allocation2] sm:$0xff]  ;;  %v63_v6 = vmul.f32 %v42_v3, %v42_v3  ;;  %v64_v7 = vmul.f32 %v43_v4, %v43_v4  ;;  %v41_v9 = vld [vmem:[#allocation2 + $0x8] sm:$0xff]  ;;  %vm136_vm12 = vcmask 58368   ;;  %s269_s6 = smov [#allocation7]  }
  0x28   :  { %v45_v1 = vshrl.u32 %v44_v0, 7  ;;  %v77_v19 = vand.u32 127, %v44_v0  ;;  %s166_s7 = sshll.u32 %s269_s6, 4  ;;  %s167_s7 = int_to_ptr.vmem [resolvable:$true] %s166_s7 }
  0x29   :  { %v65_v11 = vsel %vm56_vm0, %v63_v6, 0.0  ;;  %v68_v14 = vsel %vm56_vm0, %v64_v7, 0.0  ;;  %s237_s10 = scalar_lea.vmem %s167_s7, 128  ;;  %p242_p3 = scmp.lt.s32.totalorder %s167_s7, %s167_s7 }
  0x2a   :  { %v46_v2 = vsub.s32 0, %v45_v1  ;;  %66 = vadd.xlane.f32.xlu1 %v65_v11  ;;  %v99_v20 = vsub.s32 %v77_v19, %v45_v1  ;;  %vm78_vm1 = vcmp.lt.s32.totalorder %v45_v1, 2  ;;  %vm79_vm2 = vcmp.lt.s32.totalorder %v77_v19, 8  ;;  %p238_p2 = scmp.ne.s32.totalorder %s167_s7, %s237_s10  ;;  %p243_p4 = scmp.lt.s32.totalorder %s237_s10, %s237_s10 }
  0x2b   :  { %vm313_vm3 = vmand %vm78_vm1, %vm79_vm2 }
  0x2c   :  { %v47_v8 = vrot.slane %v40_v5, %v46_v2  ;;  %v51_v10 = vrot.slane %v41_v9, %v46_v2  ;;  %p244_p5 = por %p243_p4, %p242_p3 }
  0x2e   :  { %v52_v12 = vsub.f32 %v40_v5, %v47_v8  ;;  %v53_v13 = vsub.f32 %v41_v9, %v51_v10  ;;  %69 = vadd.xlane.f32.xlu1 %v68_v14  ;;  %p245_p6 = pnand %p244_p5, %p238_p2 }
  0x30   :  { %v54_v15 = vmul.f32 %v52_v12, %v52_v12  ;;  %v55_v16 = vmul.f32 %v53_v13, %v53_v13 }
  0x32   :  { %v57_v17 = vsel %vm56_vm0, %v54_v15, 0.0  ;;  %v60_v18 = vsel %vm56_vm0, %v55_v16, 0.0 }
  0x33   :  { %58 = vadd.xlane.f32.xlu0 %v57_v17 }
  0x37   :  { %61 = vadd.xlane.f32.xlu0 %v60_v18 }
  0xb7   :  { %v67_v22 = vpop.xlane.xlu1 %66 }
  0xb8   :  { %185 = vrsqrt.f32 %v67_v22  ;;  %vm111_vm4 = vcmp.eq.f32.partialorder %v67_v22, inf  ;;  %v114_v30 = vand.u32 2147483648, %v67_v22  ;;  %vm113_vm5 = vcmp.eq.f32.partialorder %v67_v22, 0.0 }
  0xbb   :  { %v70_v23 = vpop.xlane.xlu1 %69 }
  0xbc   :  { %187 = vrsqrt.f32 %v70_v23  ;;  %vm118_vm6 = vcmp.eq.f32.partialorder %v70_v23, inf  ;;  %v121_v33 = vand.u32 2147483648, %v70_v23  ;;  %vm120_vm8 = vcmp.eq.f32.partialorder %v70_v23, 0.0 }
  0xc0   :  { %v59_v24 = vpop.xlane.xlu0 %58 }
  0xc1   :  { %189 = vrsqrt.f32 %v59_v24  ;;  %vm83_vm7 = vcmp.eq.f32.partialorder %v59_v24, inf  ;;  %v86_v38 = vand.u32 2147483648, %v59_v24  ;;  %vm85_vm10 = vcmp.eq.f32.partialorder %v59_v24, 0.0 }
  0xc2   :  { %v186_v26 = vpop.eup %185 }
  0xc3   :  { %v110_v27 = vmul.f32 %v186_v26, %v67_v22 }
  0xc4   :  { %v62_v25 = vpop.xlane.xlu0 %61 }
  0xc5   :  { %191 = vrsqrt.f32 %v62_v25  ;;  %v112_v28 = vsel %vm111_vm4, %v67_v22, %v110_v27  ;;  %vm90_vm11 = vcmp.eq.f32.partialorder %v62_v25, inf  ;;  %v93_v44 = vand.u32 2147483648, %v62_v25 }
  0xc6   :  { %v188_v29 = vpop.eup %187  ;;  %v115_v35 = vsel %vm113_vm5, %v114_v30, %v112_v28  ;;  %vm92_vm13 = vcmp.eq.f32.partialorder %v62_v25, 0.0 }
  0xc7   :  { %v117_v32 = vmul.f32 %v188_v29, %v70_v23  ;;  %v128_v42 = vrot.slane %v115_v35, %v99_v20 }
  0xc9   :  { %v119_v36 = vsel %vm118_vm6, %v70_v23, %v117_v32 }
  0xca   :  { %v122_v39 = vsel %vm120_vm8, %v121_v33, %v119_v36 }
  0xcb   :  { %v190_v31 = vpop.eup %189  ;;  %v132_v43 = vrot.slane %v122_v39, %v99_v20 }
  0xcc   :  { %v82_v34 = vmul.f32 %v190_v31, %v59_v24 }
  0xcd   :  { %v133_v46 = vsel %vm105_vm9, %v132_v43, %v128_v42 }
  0xce   :  { %v84_v40 = vsel %vm83_vm7, %v59_v24, %v82_v34  ;;  %v135_v48 = vsel %vm313_vm3, %v133_v46, 0.0 }
  0xcf   :  { %v192_v37 = vpop.eup %191  ;;  %v87_v45 = vsel %vm85_vm10, %v86_v38, %v84_v40  ;;  %v147_v50 = vsel %vm136_vm12, %v135_v48, 0.0 }
  0xd0   :  { %v89_v41 = vmul.f32 %v192_v37, %v62_v25  ;;  %v100_v51 = vrot.slane %v87_v45, %v99_v20  ;;  %148 = vadd.xlane.f32.xlu1 %v147_v50 }
  0xd2   :  { %v91_v47 = vsel %vm90_vm11, %v62_v25, %v89_v41 }
  0xd3   :  { %v94_v49 = vsel %vm92_vm13, %v93_v44, %v91_v47 }
  0xd4   :  { %v104_v52 = vrot.slane %v94_v49, %v99_v20 }
  0xd6   :  { %v106_v53 = vsel %vm105_vm9, %v104_v52, %v100_v51 }
  0xd7   :  { %v108_v54 = vsel %vm313_vm3, %v106_v53, 0.0 }
  0xd8   :  { %v137_v55 = vsel %vm136_vm12, %v108_v54, 0.0 }
  0xd9   :  { %138 = vadd.xlane.f32.xlu0 %v137_v55 }
 0x15d   :  { %v149_v56 = vpop.xlane.xlu1 %148 }
 0x15e   :  { %v150_v57 = vrot.slane %v149_v56, 4 }
 0x160   :  { %v151_v58 = vadd.f32 %v150_v57, %v149_v56 }
 0x162   :  { %v152_v60 = vrot.slane %v151_v58, 2 }
 0x164   :  { %v153_v63 = vadd.f32 %v152_v60, %v151_v58 }
 0x166   :  { %v139_v59 = vpop.xlane.xlu0 %138  ;;  %v154_v2 = vrot.slane %v153_v63, 1 }
 0x167   :  { %v140_v61 = vrot.slane %v139_v59, 4 }
 0x168   :  { %v155_v5 = vadd.f32 %v154_v2, %v153_v63 }
 0x169   :  { %v141_v62 = vadd.f32 %v140_v61, %v139_v59 }
 0x16b   :  { %v142_v0 = vrot.slane %v141_v62, 2 }
 0x16d   :  { %v143_v1 = vadd.f32 %v142_v0, %v141_v62 }
 0x16f   :  { %v144_v3 = vrot.slane %v143_v1, 1 }
 0x171   :  { %v145_v4 = vadd.f32 %v144_v3, %v143_v1 }
 0x173   :  { %176 = vpush %v145_v4 }
 0x174   :  { %178 = vpush %v155_v5 }
 0x1a4   :  { %s177_s1 = spop %176 }
 0x1a5   :  { %s179_s8 = spop %178 }
 0x1a6   :  { %s157_s9 = sadd.f32 %s179_s8, %s177_s1 }
 0x1a8   :  { %v158_v6 = vstv %s157_s9 }
 0x1a9   :  { %159 = vst [vmem:[#allocation7] sm:$0xff] %v158_v6 }
 0x1aa   :  { %248 = shalt.err (!%p245_p6)
}
 0x1ab   :  { %s249_s13 = scalar_lea.hbm %s337_s2, 128 }
 0x1ac   :  { %p250_p7 = scmp.ne.s32.totalorder %s337_s2, %s249_s13  ;;  %p253_p8 = scmp.lt.u32.totalorder %s249_s13, %s337_s2 }
 0x1ae   :  { %p255_p9 = pnand %p253_p8, %p250_p7 }
 0x1b0   :  { %258 = shalt.err (!%p255_p9)
}
 0x1b1   :  { %169 = dma.vmem_to_hbm [thread:$0]  %s167_s7, 128, %s337_s2, [#allocation4]  }
 0x1b2   :  { %263 = dma.done.wait [#allocation4], 128  }
 0x1b3   :  { %264 = vsyncadd [#allocation4], 4294967168 }
 0x1b4   :  { %173 = vsyncpa [#allocation3], 1 }
 0x1b5   :  { %174 = vsyncpa [#allocation6], 1 }
 0x1b6   :  { %175 = vsyncpa [#allocation4], 1 }

</bundles_post_ra>
